<compile_context>
chip_gen: v5e
topology: v5e:2x2
jax: 0.10.0
libtpu: 0.0.40
codegen_flags: <defaults>
</compile_context>

<pallas_src>
from functools import partial

import jax
import jax.numpy as jnp
from jax import lax
from jax.experimental import pallas as pl
from jax.experimental.pallas import tpu as pltpu


def attention_kernel(x_ref, wqkv_ref, wproj_ref, bproj_ref, o_ref,
                     qkv_scr, ctx_scr, *, num_heads, head_dim, scale, q_tile):
    C = num_heads * head_dim
    N = x_ref.shape[1]

    # ---- fused qkv projection (bf16 x bf16 -> f32 on the MXU) -------------
    x = x_ref[0]                                                       # (N, C) bf16
    qkv = jnp.dot(x, wqkv_ref[...], preferred_element_type=jnp.float32)  # (N, 3C) f32

    # Fold the softmax scale into q while writing to scratch (N*C multiplies
    # total, instead of N*N per head when scaling the logits).
    qkv_scr[:, 0:C] = (qkv[:, 0:C] * scale).astype(jnp.bfloat16)
    qkv_scr[:, C:3 * C] = qkv[:, C:3 * C].astype(jnp.bfloat16)

    # ---- per-head attention, query-tiled -----------------------------------
    for h in range(num_heads):                      # static python loop (small H)
        q_off = h * head_dim
        k_off = C + q_off
        v_off = 2 * C + q_off

        q0 = 0
        while q0 < N:                               # static query tiling
            tq = min(q_tile, N - q0)
            qh = qkv_scr[q0:q0 + tq, q_off:q_off + head_dim]         # (tq, hd) bf16
            kh = qkv_scr[:, k_off:k_off + head_dim]                  # (N,  hd) bf16
            vh = qkv_scr[:, v_off:v_off + head_dim]                  # (N,  hd) bf16

            # q @ k^T without an explicit transpose (contract the head dims).
            logits = lax.dot_general(
                qh, kh, dimension_numbers=(((1,), (1,)), ((), ())),
                preferred_element_type=jnp.float32)                  # (tq, N) f32

            # numerically-stable softmax; normalization deferred past PV.
            m = jnp.max(logits, axis=-1, keepdims=True)
            p = jnp.exp(logits - m)                                  # (tq, N) f32
            s = jnp.sum(p, axis=-1, keepdims=True)                   # (tq, 1) f32

            oh = jnp.dot(p.astype(jnp.bfloat16), vh,
                         preferred_element_type=jnp.float32)         # (tq, hd) f32
            oh = oh * pl.reciprocal(s, approx=True)
            # attn_drop is identity (p=0.0); GateLayer is folded into w_proj.
            ctx_scr[q0:q0 + tq, q_off:q_off + head_dim] = oh.astype(jnp.bfloat16)
            q0 += tq

    # ---- output projection (gate already folded into wproj) ----------------
    out = jnp.dot(ctx_scr[...], wproj_ref[...],
                  preferred_element_type=jnp.float32)                # (N, C) f32
    out = out + bproj_ref[...]
    # proj_drop is identity (p = 0.0)
    o_ref[0] = out.astype(o_ref.dtype)


def _estimate_vmem_bytes(N, C, out_bytes):
    bf16 = 2
    scratch = N * 3 * C * bf16 + N * C * bf16
    io_blocks = 2 * N * C * bf16 + 2 * N * C * out_bytes        # double-buffered x / out
    weights = 2 * (C * 3 * C * bf16 + C * C * bf16 + C * 4)     # default double-buffered
    return scratch + io_blocks + weights


def attention_forward(x, w_qkv, w_proj, b_proj, gate, num_heads, q_tile=128):
    B, N, C = x.shape
    head_dim = C // num_heads
    scale = float(head_dim) ** -0.5

    # Fold the per-head GateLayer scale into the output-projection rows:
    #   (ctx * gate_per_channel) @ W  ==  ctx @ (gate_per_channel[:, None] * W)
    gate_rows = jnp.repeat(gate.reshape(num_heads), head_dim).reshape(C, 1)
    w_proj_gated = (w_proj.astype(jnp.float32) * gate_rows).astype(jnp.bfloat16)

    x_bf = x.astype(jnp.bfloat16)
    w_qkv_bf = w_qkv.astype(jnp.bfloat16)
    b_proj_f32 = b_proj.reshape(1, C).astype(jnp.float32)

    # TODO(synk): if N is not a multiple of 8 or C < 128 at realistic model
    # sizes (e.g. ViT N=197), pad N/C to (8,128)-aligned sizes here and slice
    # the result afterwards to keep stores unmasked.

    q_tile = max(1, min(q_tile, N))
    kernel = partial(attention_kernel, num_heads=num_heads,
                     head_dim=head_dim, scale=scale, q_tile=q_tile)

    vmem_limit = None
    est = _estimate_vmem_bytes(N, C, jnp.dtype(x.dtype).itemsize)
    if est > 12 * 1024 * 1024:
        # leave headroom; keep below v7x's 64 MiB physical VMEM.
        vmem_limit = int(min(est * 1.25 + (2 << 20), 56 * 1024 * 1024))

    return pl.pallas_call(
        kernel,
        out_shape=jax.ShapeDtypeStruct((B, N, C), x.dtype),
        grid_spec=pltpu.PrefetchScalarGridSpec(
            num_scalar_prefetch=0,
            grid=(B,),
            in_specs=[
                pl.BlockSpec((1, N, C), lambda b: (b, 0, 0)),        # x (bf16)
                pl.BlockSpec((C, 3 * C), lambda b: (0, 0)),          # w_qkv (bf16)
                pl.BlockSpec((C, C), lambda b: (0, 0)),              # w_proj*gate (bf16)
                pl.BlockSpec((1, C), lambda b: (0, 0)),              # b_proj (f32)
            ],
            out_specs=pl.BlockSpec((1, N, C), lambda b: (b, 0, 0)),
            scratch_shapes=[
                pltpu.VMEM((N, 3 * C), jnp.bfloat16),                # qkv (q pre-scaled)
                pltpu.VMEM((N, C), jnp.bfloat16),                    # per-head context
            ],
        ),
        compiler_params=pltpu.CompilerParams(
            dimension_semantics=("parallel",),
            vmem_limit_bytes=vmem_limit),
    )(x_bf, w_qkv_bf, w_proj_gated, b_proj_f32)


def attention_reference(x, w_qkv, w_proj, b_proj, gate, num_heads):
    """Plain-JAX mirror of the PyTorch forward pass (for verification)."""
    B, N, C = x.shape
    hd = C // num_heads
    scale = float(hd) ** -0.5
    qkv = x @ w_qkv                                                   # (B, N, 3C)
    qkv = qkv.reshape(B, N, 3, num_heads, hd).transpose(2, 0, 3, 1, 4)
    q, k, v = qkv[0], qkv[1], qkv[2]                                  # (B, H, N, hd)
    attn = jnp.einsum('bhqd,bhkd->bhqk', q, k) * scale
    attn = jax.nn.softmax(attn, axis=-1)
    o = jnp.einsum('bhqk,bhkd->bhqd', attn, v)
    o = o * gate.reshape(1, num_heads, 1, 1)                          # GateLayer
    o = o.transpose(0, 2, 1, 3).reshape(B, N, C)
    return o @ w_proj + b_proj.reshape(C)


if __name__ == "__main__":
    # small shapes consistent with the module: B=2, tokens N=8, dim C=32, 4 heads
    B, N, C = 2, 8, 32
    num_heads = 4

    key = jax.random.PRNGKey(0)
    kx, kqkv, kproj, kb, kg = jax.random.split(key, 5)

    x = jax.random.normal(kx, (B, N, C), dtype=jnp.float32)
    # deterministic synthetic parameters (qkv_bias=False per module default)
    w_qkv = jax.random.normal(kqkv, (C, 3 * C), dtype=jnp.float32) * 0.05
    w_proj = jax.random.normal(kproj, (C, C), dtype=jnp.float32) * 0.05
    b_proj = jax.random.normal(kb, (1, C), dtype=jnp.float32) * 0.05
    gate = jax.random.normal(kg, (1, num_heads), dtype=jnp.float32)   # GateLayer weight

    out = attention_forward(x, w_qkv, w_proj, b_proj, gate, num_heads)
    out = jax.block_until_ready(out)

    ref = attention_reference(x, w_qkv, w_proj, b_proj, gate, num_heads)
    assert out.shape == (B, N, C)
    # bf16 matmul inputs + approximate reciprocal -> slightly loosened tolerance
    assert jnp.allclose(out, ref, atol=2e-2, rtol=2e-2), "mismatch vs reference"

    print("KERNEL_OK")
</pallas_src>

<mosaic_0001>
module attributes {stable_mosaic.version = 11 : i64} {
  func.func @attention_kernel(%arg0: i32, %arg1: memref<1x8x32xbf16, #tpu.memory_space<vmem>>, %arg2: memref<32x96xbf16, #tpu.memory_space<vmem>>, %arg3: memref<32x32xbf16, #tpu.memory_space<vmem>>, %arg4: memref<1x32xf32, #tpu.memory_space<vmem>>, %arg5: memref<1x8x32xf32, #tpu.memory_space<vmem>>, %arg6: memref<8x96xbf16, #tpu.memory_space<vmem>>, %arg7: memref<8x32xbf16, #tpu.memory_space<vmem>>) attributes {dimension_semantics = [#tpu.dimension_semantics<parallel>], iteration_bounds = array<i64: 2>, scalar_prefetch = 0 : i64, scratch_operands = 2 : i64, tpu.core_type = #tpu.core_type<tc>, window_params = [{transform_indices = @transform_0, window_bounds = array<i64: 1, 8, 32>}, {pipeline_mode = #tpu.pipeline_mode<synchronous>, transform_indices = @transform_1, window_bounds = array<i64: 32, 96>}, {pipeline_mode = #tpu.pipeline_mode<synchronous>, transform_indices = @transform_2, window_bounds = array<i64: 32, 32>}, {pipeline_mode = #tpu.pipeline_mode<synchronous>, transform_indices = @transform_3, window_bounds = array<i64: 1, 32>}, {transform_indices = @transform_4, window_bounds = array<i64: 1, 8, 32>}]} {
    %c0 = arith.constant 0 : index
    %c0_0 = arith.constant 0 : index
    %c0_1 = arith.constant 0 : index
    %0 = vector.load %arg1[%c0, %c0_0, %c0_1] : memref<1x8x32xbf16, #tpu.memory_space<vmem>>, vector<1x8x32xbf16>
    %1 = vector.shape_cast %0 : vector<1x8x32xbf16> to vector<8x32xbf16>
    %c0_2 = arith.constant 0 : index
    %c0_3 = arith.constant 0 : index
    %2 = vector.load %arg2[%c0_2, %c0_3] : memref<32x96xbf16, #tpu.memory_space<vmem>>, vector<32x96xbf16>
    %cst = arith.constant dense<0.000000e+00> : vector<8x96xf32>
    %3 = tpu.matmul %1, %2, %cst {dimension_numbers = #tpu.dot_dimension_numbers<[1], [0], [0], [1], [0, 0, 1, 1], [], []>} : vector<8x32xbf16>, vector<32x96xbf16>, vector<8x96xf32> -> vector<8x96xf32>
    %4 = vector.extract_strided_slice %3 {offsets = [0, 0], sizes = [8, 32], strides = [1, 1]} : vector<8x96xf32> to vector<8x32xf32>
    %cst_4 = arith.constant 0.353553385 : f32
    %5 = vector.broadcast %cst_4 : f32 to vector<8x32xf32>
    %6 = arith.mulf %4, %5 : vector<8x32xf32>
    %7 = arith.truncf %6 : vector<8x32xf32> to vector<8x32xbf16>
    %c0_5 = arith.constant 0 : index
    %c0_6 = arith.constant 0 : index
    %8 = vector.load %arg6[%c0_5, %c0_6] : memref<8x96xbf16, #tpu.memory_space<vmem>>, vector<8x32xbf16>
    tpu.vector_store %arg6[%c0_5, %c0_6], %7 {strides = array<i32>} : memref<8x96xbf16, #tpu.memory_space<vmem>>, vector<8x32xbf16>,
    %9 = vector.extract_strided_slice %3 {offsets = [0, 32], sizes = [8, 64], strides = [1, 1]} : vector<8x96xf32> to vector<8x64xf32>
    %10 = arith.truncf %9 : vector<8x64xf32> to vector<8x64xbf16>
    %c0_7 = arith.constant 0 : index
    %c32 = arith.constant 32 : index
    %11 = vector.load %arg6[%c0_7, %c32] : memref<8x96xbf16, #tpu.memory_space<vmem>>, vector<8x64xbf16>
    tpu.vector_store %arg6[%c0_7, %c32], %10 {strides = array<i32>} : memref<8x96xbf16, #tpu.memory_space<vmem>>, vector<8x64xbf16>,
    %c0_8 = arith.constant 0 : index
    %c0_9 = arith.constant 0 : index
    %12 = vector.load %arg6[%c0_8, %c0_9] : memref<8x96xbf16, #tpu.memory_space<vmem>>, vector<8x8xbf16>
    %c0_10 = arith.constant 0 : index
    %c32_11 = arith.constant 32 : index
    %13 = vector.load %arg6[%c0_10, %c32_11] : memref<8x96xbf16, #tpu.memory_space<vmem>>, vector<8x8xbf16>
    %c0_12 = arith.constant 0 : index
    %c64 = arith.constant 64 : index
    %14 = vector.load %arg6[%c0_12, %c64] : memref<8x96xbf16, #tpu.memory_space<vmem>>, vector<8x8xbf16>
    %cst_13 = arith.constant dense<0.000000e+00> : vector<8x8xf32>
    %15 = tpu.matmul %12, %13, %cst_13 {dimension_numbers = #tpu.dot_dimension_numbers<[1], [1], [0], [0], [0, 0, 1, 0], [], []>} : vector<8x8xbf16>, vector<8x8xbf16>, vector<8x8xf32> -> vector<8x8xf32>
    %cst_14 = arith.constant dense<0xFF800000> : vector<8xf32>
    %16 = vector.multi_reduction <maximumf>, %15, %cst_14 [1] : vector<8x8xf32> to vector<8xf32>
    %17 = vector.shape_cast %16 : vector<8xf32> to vector<8x1xf32>
    %18 = vector.broadcast %17 : vector<8x1xf32> to vector<8x8xf32>
    %19 = arith.subf %15, %18 : vector<8x8xf32>
    %20 = math.exp %19 : vector<8x8xf32>
    %cst_15 = arith.constant dense<0.000000e+00> : vector<8xf32>
    %21 = vector.multi_reduction <add>, %20, %cst_15 [1] : vector<8x8xf32> to vector<8xf32>
    %22 = vector.shape_cast %21 : vector<8xf32> to vector<8x1xf32>
    %23 = arith.truncf %20 : vector<8x8xf32> to vector<8x8xbf16>
    %cst_16 = arith.constant dense<0.000000e+00> : vector<8x8xf32>
    %24 = tpu.matmul %23, %14, %cst_16 {dimension_numbers = #tpu.dot_dimension_numbers<[1], [0], [0], [1], [0, 0, 1, 1], [], []>} : vector<8x8xbf16>, vector<8x8xbf16>, vector<8x8xf32> -> vector<8x8xf32>
    %25 = tpu.reciprocal %22 {approx = true} : vector<8x1xf32> -> vector<8x1xf32>
    %26 = vector.broadcast %25 : vector<8x1xf32> to vector<8x8xf32>
    %27 = arith.mulf %24, %26 : vector<8x8xf32>
    %28 = arith.truncf %27 : vector<8x8xf32> to vector<8x8xbf16>
    %c0_17 = arith.constant 0 : index
    %c0_18 = arith.constant 0 : index
    %29 = vector.load %arg7[%c0_17, %c0_18] : memref<8x32xbf16, #tpu.memory_space<vmem>>, vector<8x8xbf16>
    tpu.vector_store %arg7[%c0_17, %c0_18], %28 {strides = array<i32>} : memref<8x32xbf16, #tpu.memory_space<vmem>>, vector<8x8xbf16>,
    %c0_19 = arith.constant 0 : index
    %c8 = arith.constant 8 : index
    %30 = vector.load %arg6[%c0_19, %c8] : memref<8x96xbf16, #tpu.memory_space<vmem>>, vector<8x8xbf16>
    %c0_20 = arith.constant 0 : index
    %c40 = arith.constant 40 : index
    %31 = vector.load %arg6[%c0_20, %c40] : memref<8x96xbf16, #tpu.memory_space<vmem>>, vector<8x8xbf16>
    %c0_21 = arith.constant 0 : index
    %c72 = arith.constant 72 : index
    %32 = vector.load %arg6[%c0_21, %c72] : memref<8x96xbf16, #tpu.memory_space<vmem>>, vector<8x8xbf16>
    %cst_22 = arith.constant dense<0.000000e+00> : vector<8x8xf32>
    %33 = tpu.matmul %30, %31, %cst_22 {dimension_numbers = #tpu.dot_dimension_numbers<[1], [1], [0], [0], [0, 0, 1, 0], [], []>} : vector<8x8xbf16>, vector<8x8xbf16>, vector<8x8xf32> -> vector<8x8xf32>
    %cst_23 = arith.constant dense<0xFF800000> : vector<8xf32>
    %34 = vector.multi_reduction <maximumf>, %33, %cst_23 [1] : vector<8x8xf32> to vector<8xf32>
    %35 = vector.shape_cast %34 : vector<8xf32> to vector<8x1xf32>
    %36 = vector.broadcast %35 : vector<8x1xf32> to vector<8x8xf32>
    %37 = arith.subf %33, %36 : vector<8x8xf32>
    %38 = math.exp %37 : vector<8x8xf32>
    %cst_24 = arith.constant dense<0.000000e+00> : vector<8xf32>
    %39 = vector.multi_reduction <add>, %38, %cst_24 [1] : vector<8x8xf32> to vector<8xf32>
    %40 = vector.shape_cast %39 : vector<8xf32> to vector<8x1xf32>
    %41 = arith.truncf %38 : vector<8x8xf32> to vector<8x8xbf16>
    %cst_25 = arith.constant dense<0.000000e+00> : vector<8x8xf32>
    %42 = tpu.matmul %41, %32, %cst_25 {dimension_numbers = #tpu.dot_dimension_numbers<[1], [0], [0], [1], [0, 0, 1, 1], [], []>} : vector<8x8xbf16>, vector<8x8xbf16>, vector<8x8xf32> -> vector<8x8xf32>
    %43 = tpu.reciprocal %40 {approx = true} : vector<8x1xf32> -> vector<8x1xf32>
    %44 = vector.broadcast %43 : vector<8x1xf32> to vector<8x8xf32>
    %45 = arith.mulf %42, %44 : vector<8x8xf32>
    %46 = arith.truncf %45 : vector<8x8xf32> to vector<8x8xbf16>
    %c0_26 = arith.constant 0 : index
    %c8_27 = arith.constant 8 : index
    %47 = vector.load %arg7[%c0_26, %c8_27] : memref<8x32xbf16, #tpu.memory_space<vmem>>, vector<8x8xbf16>
    tpu.vector_store %arg7[%c0_26, %c8_27], %46 {strides = array<i32>} : memref<8x32xbf16, #tpu.memory_space<vmem>>, vector<8x8xbf16>,
    %c0_28 = arith.constant 0 : index
    %c16 = arith.constant 16 : index
    %48 = vector.load %arg6[%c0_28, %c16] : memref<8x96xbf16, #tpu.memory_space<vmem>>, vector<8x8xbf16>
    %c0_29 = arith.constant 0 : index
    %c48 = arith.constant 48 : index
    %49 = vector.load %arg6[%c0_29, %c48] : memref<8x96xbf16, #tpu.memory_space<vmem>>, vector<8x8xbf16>
    %c0_30 = arith.constant 0 : index
    %c80 = arith.constant 80 : index
    %50 = vector.load %arg6[%c0_30, %c80] : memref<8x96xbf16, #tpu.memory_space<vmem>>, vector<8x8xbf16>
    %cst_31 = arith.constant dense<0.000000e+00> : vector<8x8xf32>
    %51 = tpu.matmul %48, %49, %cst_31 {dimension_numbers = #tpu.dot_dimension_numbers<[1], [1], [0], [0], [0, 0, 1, 0], [], []>} : vector<8x8xbf16>, vector<8x8xbf16>, vector<8x8xf32> -> vector<8x8xf32>
    %cst_32 = arith.constant dense<0xFF800000> : vector<8xf32>
    %52 = vector.multi_reduction <maximumf>, %51, %cst_32 [1] : vector<8x8xf32> to vector<8xf32>
    %53 = vector.shape_cast %52 : vector<8xf32> to vector<8x1xf32>
    %54 = vector.broadcast %53 : vector<8x1xf32> to vector<8x8xf32>
    %55 = arith.subf %51, %54 : vector<8x8xf32>
    %56 = math.exp %55 : vector<8x8xf32>
    %cst_33 = arith.constant dense<0.000000e+00> : vector<8xf32>
    %57 = vector.multi_reduction <add>, %56, %cst_33 [1] : vector<8x8xf32> to vector<8xf32>
    %58 = vector.shape_cast %57 : vector<8xf32> to vector<8x1xf32>
    %59 = arith.truncf %56 : vector<8x8xf32> to vector<8x8xbf16>
    %cst_34 = arith.constant dense<0.000000e+00> : vector<8x8xf32>
    %60 = tpu.matmul %59, %50, %cst_34 {dimension_numbers = #tpu.dot_dimension_numbers<[1], [0], [0], [1], [0, 0, 1, 1], [], []>} : vector<8x8xbf16>, vector<8x8xbf16>, vector<8x8xf32> -> vector<8x8xf32>
    %61 = tpu.reciprocal %58 {approx = true} : vector<8x1xf32> -> vector<8x1xf32>
    %62 = vector.broadcast %61 : vector<8x1xf32> to vector<8x8xf32>
    %63 = arith.mulf %60, %62 : vector<8x8xf32>
    %64 = arith.truncf %63 : vector<8x8xf32> to vector<8x8xbf16>
    %c0_35 = arith.constant 0 : index
    %c16_36 = arith.constant 16 : index
    %65 = vector.load %arg7[%c0_35, %c16_36] : memref<8x32xbf16, #tpu.memory_space<vmem>>, vector<8x8xbf16>
    tpu.vector_store %arg7[%c0_35, %c16_36], %64 {strides = array<i32>} : memref<8x32xbf16, #tpu.memory_space<vmem>>, vector<8x8xbf16>,
    %c0_37 = arith.constant 0 : index
    %c24 = arith.constant 24 : index
    %66 = vector.load %arg6[%c0_37, %c24] : memref<8x96xbf16, #tpu.memory_space<vmem>>, vector<8x8xbf16>
    %c0_38 = arith.constant 0 : index
    %c56 = arith.constant 56 : index
    %67 = vector.load %arg6[%c0_38, %c56] : memref<8x96xbf16, #tpu.memory_space<vmem>>, vector<8x8xbf16>
    %c0_39 = arith.constant 0 : index
    %c88 = arith.constant 88 : index
    %68 = vector.load %arg6[%c0_39, %c88] : memref<8x96xbf16, #tpu.memory_space<vmem>>, vector<8x8xbf16>
    %cst_40 = arith.constant dense<0.000000e+00> : vector<8x8xf32>
    %69 = tpu.matmul %66, %67, %cst_40 {dimension_numbers = #tpu.dot_dimension_numbers<[1], [1], [0], [0], [0, 0, 1, 0], [], []>} : vector<8x8xbf16>, vector<8x8xbf16>, vector<8x8xf32> -> vector<8x8xf32>
    %cst_41 = arith.constant dense<0xFF800000> : vector<8xf32>
    %70 = vector.multi_reduction <maximumf>, %69, %cst_41 [1] : vector<8x8xf32> to vector<8xf32>
    %71 = vector.shape_cast %70 : vector<8xf32> to vector<8x1xf32>
    %72 = vector.broadcast %71 : vector<8x1xf32> to vector<8x8xf32>
    %73 = arith.subf %69, %72 : vector<8x8xf32>
    %74 = math.exp %73 : vector<8x8xf32>
    %cst_42 = arith.constant dense<0.000000e+00> : vector<8xf32>
    %75 = vector.multi_reduction <add>, %74, %cst_42 [1] : vector<8x8xf32> to vector<8xf32>
    %76 = vector.shape_cast %75 : vector<8xf32> to vector<8x1xf32>
    %77 = arith.truncf %74 : vector<8x8xf32> to vector<8x8xbf16>
    %cst_43 = arith.constant dense<0.000000e+00> : vector<8x8xf32>
    %78 = tpu.matmul %77, %68, %cst_43 {dimension_numbers = #tpu.dot_dimension_numbers<[1], [0], [0], [1], [0, 0, 1, 1], [], []>} : vector<8x8xbf16>, vector<8x8xbf16>, vector<8x8xf32> -> vector<8x8xf32>
    %79 = tpu.reciprocal %76 {approx = true} : vector<8x1xf32> -> vector<8x1xf32>
    %80 = vector.broadcast %79 : vector<8x1xf32> to vector<8x8xf32>
    %81 = arith.mulf %78, %80 : vector<8x8xf32>
    %82 = arith.truncf %81 : vector<8x8xf32> to vector<8x8xbf16>
    %c0_44 = arith.constant 0 : index
    %c24_45 = arith.constant 24 : index
    %83 = vector.load %arg7[%c0_44, %c24_45] : memref<8x32xbf16, #tpu.memory_space<vmem>>, vector<8x8xbf16>
    tpu.vector_store %arg7[%c0_44, %c24_45], %82 {strides = array<i32>} : memref<8x32xbf16, #tpu.memory_space<vmem>>, vector<8x8xbf16>,
    %c0_46 = arith.constant 0 : index
    %c0_47 = arith.constant 0 : index
    %84 = vector.load %arg7[%c0_46, %c0_47] : memref<8x32xbf16, #tpu.memory_space<vmem>>, vector<8x32xbf16>
    %c0_48 = arith.constant 0 : index
    %c0_49 = arith.constant 0 : index
    %85 = vector.load %arg3[%c0_48, %c0_49] : memref<32x32xbf16, #tpu.memory_space<vmem>>, vector<32x32xbf16>
    %cst_50 = arith.constant dense<0.000000e+00> : vector<8x32xf32>
    %86 = tpu.matmul %84, %85, %cst_50 {dimension_numbers = #tpu.dot_dimension_numbers<[1], [0], [0], [1], [0, 0, 1, 1], [], []>} : vector<8x32xbf16>, vector<32x32xbf16>, vector<8x32xf32> -> vector<8x32xf32>
    %c0_51 = arith.constant 0 : index
    %c0_52 = arith.constant 0 : index
    %87 = vector.load %arg4[%c0_51, %c0_52] : memref<1x32xf32, #tpu.memory_space<vmem>>, vector<1x32xf32>
    %88 = vector.broadcast %87 : vector<1x32xf32> to vector<8x32xf32>
    %89 = arith.addf %86, %88 : vector<8x32xf32>
    %c0_53 = arith.constant 0 : index
    %c0_54 = arith.constant 0 : index
    %c0_55 = arith.constant 0 : index
    %90 = vector.load %arg5[%c0_53, %c0_54, %c0_55] : memref<1x8x32xf32, #tpu.memory_space<vmem>>, vector<1x8x32xf32>
    %91 = vector.shape_cast %90 : vector<1x8x32xf32> to vector<8x32xf32>
    %92 = vector.shape_cast %89 : vector<8x32xf32> to vector<1x8x32xf32>
    tpu.vector_store %arg5[%c0_53, %c0_54, %c0_55], %92 {strides = array<i32>} : memref<1x8x32xf32, #tpu.memory_space<vmem>>, vector<1x8x32xf32>,
    return
  }
  func.func @transform_0(%arg0: i32) -> (i32, i32, i32) {
    %c0_i32 = arith.constant 0 : i32
    %c0_i32_0 = arith.constant 0 : i32
    %c0_i32_1 = arith.constant 0 : i32
    return %arg0, %c0_i32, %c0_i32_0 : i32, i32, i32
  }
  func.func @transform_1(%arg0: i32) -> (i32, i32) {
    %c0_i32 = arith.constant 0 : i32
    %c0_i32_0 = arith.constant 0 : i32
    %c0_i32_1 = arith.constant 0 : i32
    return %c0_i32, %c0_i32_0 : i32, i32
  }
  func.func @transform_2(%arg0: i32) -> (i32, i32) {
    %c0_i32 = arith.constant 0 : i32
    %c0_i32_0 = arith.constant 0 : i32
    %c0_i32_1 = arith.constant 0 : i32
    return %c0_i32, %c0_i32_0 : i32, i32
  }
  func.func @transform_3(%arg0: i32) -> (i32, i32) {
    %c0_i32 = arith.constant 0 : i32
    %c0_i32_0 = arith.constant 0 : i32
    %c0_i32_1 = arith.constant 0 : i32
    return %c0_i32, %c0_i32_0 : i32, i32
  }
  func.func @transform_4(%arg0: i32) -> (i32, i32, i32) {
    %c0_i32 = arith.constant 0 : i32
    %c0_i32_0 = arith.constant 0 : i32
    %c0_i32_1 = arith.constant 0 : i32
    return %arg0, %c0_i32, %c0_i32_0 : i32, i32, i32
  }
}

</mosaic_0001>

<bundles_post_ra>
// kernel: tpu_custom_call.1
= control target key start
LH: loop header
LB: loop body
LE: loop exit
PB: predicated region body
PF: predicated region fallthrough
CT: control target
= control target key end

     0   :  { %9 = vsyncpa [#allocation5], 0  ;;  %s1229_s0 = inlined_call_operand.hbm [shape: bf16[2,8,32], index: 0, kind: input, shape index: {}]   ;;  %s1230_s1 = inlined_call_operand.hbm [shape: bf16[32,96], index: 1, kind: input, shape index: {}]   ;;  %s1231_s2 = inlined_call_operand.hbm [shape: bf16[32,32], index: 2, kind: input, shape index: {}]   ;;  %s1232_s3 = inlined_call_operand.vmem [shape: f32[1,32], index: 3, kind: input, shape index: {}]   ;;  %s1233_s4 = inlined_call_operand.hbm [shape: f32[2,8,32], index: 4, kind: output, shape index: {}]  }
   0x1   :  { %11 = vsyncpa [#allocation5 + $0x1], 0 }
   0x2   :  { %12 = vsyncpa [#allocation8], 0 }
   0x3   :  { %13 = vsyncpa [#allocation6], 0 }
   0x4   :  { %15 = vsyncpa [#allocation6 + $0x1], 0  ;;  %s1048_s15 = smov 0   ;;  %s1050_s16 = smov 0  }
   0x5   :  { %s1052_s17 = smov 0   ;;  %s1054_s18 = smov 0  }
   0x6 LB: > { %s152_s21 = sshll.u32 %s1230_s1, 4  ;;  %s1072_s22 = sadd.s32 4294967295, %s1003_s18   ;;  %s1003_s18 = sphi %s1054_s18, %s1244_s18   ;;  %s999_s17 = sphi %s1052_s17, %s1243_s17   ;;  %s995_s16 = sphi %s1050_s16, %s1242_s16   ;;  %s991_s15 = sphi %s1048_s15, %s1241_s15   ;;  %s153_s21 = int_to_ptr.hbm [resolvable:$true] %s152_s21 }
   0x7   : > { %p698_p0 = scmp.ge.s32.totalorder %s1003_s18, 1  ;;  %p42_p1 = scmp.eq.s32.totalorder %s1072_s22, 0 }
   0x8   : > { %p141_p2 = scmp.lt.s32.totalorder %s1003_s18, 3  ;;  %s1005_s24 = smov [#allocation7]  }
   0x9   : > { %s154_s25 = sshll.u32 %s1005_s24, 4  ;;  %s166_s28 = sshll.u32 %s1231_s2, 4  ;;  %s155_s25 = int_to_ptr.vmem [resolvable:$true] %s154_s25  ;;  %s167_s28 = int_to_ptr.hbm [resolvable:$true] %s166_s28 }
   0xa   : > { %p1077_p3 = pnand %p698_p0, %p141_p2  ;;  %s1006_s29 = smov [#allocation9]  }
   0xb   : > { %s168_s30 = sshll.u32 %s1006_s29, 4  ;;  %s1007_s5 = smov 64   ;;  %s169_s30 = int_to_ptr.vmem [resolvable:$true] %s168_s30 }
   0xc   : > { %p755_p4 = pneg %p1077_p3  ;;  %s1008_s6 = smov 4  }
   0xd   : > { %s697_s7 = sadd.s32 4294967294, %s1003_s18   ;;  %s1091_s8 = sadd.s32 1, %s1003_s18  }
   0xe   : > { %p756_p6 = pnand %p755_p4, %p42_p1  ;;  %s25_s9 = ssub.s32 %s1003_s18, %s1091_s8 }
   0xf   : > { %s28_s10 = sadd.s32 1, %s999_s17  ;;  %p26_p7 = scmp.eq.s32.totalorder %s25_s9, 0 }
  0x10   : > { %758 = dma.hbm_to_vmem [thread:$0]  (!%p756_p6), %s153_s21, 256, %s155_s25, [#allocation8], %s1007_s5, %s1007_s5, %s1008_s6  }
  0x11   : > { %761 = dma.hbm_to_vmem [thread:$0]  (!%p756_p6), %s167_s28, 256, %s169_s30, [#allocation8], %s1007_s5, %s1007_s5, %s1008_s6  }
  0x12   : > { %p35_p8 = scmp.ne.s32.totalorder %s999_s17, %s995_s16  ;;  %p36_p9 = scmp.eq.s32.totalorder %s1003_s18, 0 }
  0x13   : > { %p41_p10 = scmp.ne.s32.totalorder %s995_s16, %s991_s15  ;;  %p128_p13 = scmp.eq.s32.totalorder %s1072_s22, 1 }
  0x14   : > { %s1102_s11 = scalar_select %p26_p7, %s999_s17, %s28_s10  }
  0x15   : > { %p1104_p11 = por %p36_p9, %p35_p8  ;;  %p1110_p12 = por %p42_p1, %p41_p10 }
  0x16   : > { %p134_p0 = scmp.eq.s32.totalorder %s697_s7, 1  ;;  %p772_p2 = scmp.lt.s32.totalorder %s1003_s18, 2 }
  0x17   : > { %s185_s14 = sand.u32 1, %s999_s17   ;;  %p1117_p4 = por %p128_p13, %p35_p8 }
  0x18   : > { %p1121_p6 = por %p134_p0, %p41_p10  ;;  %s702_s21 = sshll.u32 %s185_s14, 2 }
  0x19   : > { %s703_s24 = sshll.u32 %s1003_s18, 2  ;;  %s189_s28 = scalar_lea.vmem [#allocation4], %s702_s21 }
  0x1a   : > { %s193_s27 = scalar_lea.hbm %s1229_s0, %s703_s24  ;;  %s197_s29 = sshll.u32 %s189_s28, 4  ;;  %s198_s29 = int_to_ptr.vmem [resolvable:$true] %s197_s29 }
  0x1b   : > { %s195_s30 = sshll.u32 %s193_s27, 4  ;;  %p1131_p7 = pnand %p772_p2, %p1104_p11  ;;  %s196_s30 = int_to_ptr.hbm [resolvable:$true] %s195_s30 }
  0x1c   : > { %s186_s6 = scalar_lea.sflag [#allocation5], %s185_s14  ;;  %s903_s7 = sshra.s32 %s196_s30, 4  ;;  %s904_s7 = int_to_ptr.hbm [resolvable:$true] %s903_s7 }
  0x1d   : > { %s905_s9 = scalar_lea.hbm %s904_s7, 4  ;;  %p907_p9 = pneg %p1131_p7 }
  0x1e   : > { %p906_p8 = scmp.ne.s32.totalorder %s904_s7, %s905_s9  ;;  %s910_s24 = scalar_lea.hbm %s1229_s0, 8 }
  0x1f   : > { %p911_p11 = scmp.lt.s32.totalorder %s904_s7, %s1229_s0  ;;  %p912_p0 = scmp.lt.s32.totalorder %s910_s24, %s905_s9 }
  0x20   : > { %p908_p10 = pnand %p907_p9, %p906_p8 }
  0x21   : > { %p913_p2 = por %p912_p0, %p911_p11 }
  0x22   : > { %p909_p13 = pneg %p908_p10 }
  0x24   : > { %p914_p5 = pnand %p913_p2, %p909_p13 }
  0x26   : > { %917 = shalt.err (!%p914_p5)
}
  0x27   : > { %765 = dma.hbm_to_vmem [thread:$0]  (!%p1131_p7), %s196_s30, 64, %s198_s29, %s186_s6  }
  0x28   : > { %206 = sbr.rel (%p1077_p3) target bundleno = 1005 (0x3ed), region = 36  ;;  %s1148_s14 = sand.u32 (!%p1077_p3), 1, %s995_s16  }
  0x29   : > { %s705_s26 = sshll.u32 (!%p1077_p3), %s1148_s14, 2  ;;  %s209_s27 = scalar_lea.sflag (!%p1077_p3), [#allocation5], %s1148_s14 }
  0x2a   : > { %s212_s28 = scalar_lea.vmem (!%p1077_p3), [#allocation4], %s705_s26 }
  0x2d   : > { %978 = dma.done.wait (%p1110_p12), %s209_s27, 64  }
  0x2e   : > { %980 = vsyncadd (%p1110_p12), %s209_s27, 4294967232 }
  0x2f   : > { %982 = dma.done.wait (%p42_p1), [#allocation8], 512  }
  0x30   : > { %984 = vsyncadd (%p42_p1), [#allocation8], 4294966784  ;;  %v740_v0 = vld [vmem:[#allocation7 + $0x8] sm:$0xff]  ;;  %v739_v1 = vld [vmem:[#allocation7] sm:$0xff]  ;;  %vm266_vm0 = vcmask 261120   ;;  %vm285_vm1 = vcmask 257024  }
  0x31   : > { %276 = vmatpush.bf16.msra.mxu0 %v740_v0  ;;  %v249_v2 = vld [vmem:[%s212_s28] sm:$0xf]  ;;  %vm288_vm2 = vcmask 781568   ;;  %s1009_s23 = smov 104   ;;  %s1010_s13 = smov 120   ;;  %vm296_vm3 = vcmask 64512  }
  0x32   : > { %s1011_s29 = smov 96   ;;  %s1012_s30 = smov 80   ;;  %vm331_vm4 = vcmask 1043456   ;;  %vm351_vm5 = vcmask 60416   ;;  %vm418_vm6 = vcmask 126016   ;;  %vm485_vm7 = vcmask 191616  }
  0x33   : > { %s1013_s5 = smov 72   ;;  %s1014_s6 = smov 88   ;;  %vm552_vm8 = vcmask 257216  }
  0x34   : > { %s1015_s7 = smov 64   ;;  %s1016_s9 = smov 112  }
  0x35   : > { %277 = vmatpush.bf16.msra.mxu0 %v739_v1  ;;  %s1017_s10 = smov 56   ;;  %s1018_s21 = smov 48  }
  0x36   : > { %s1019_s24 = smov 40   ;;  %s1020_s25 = smov 8  }
  0x37   : > { %s1021_s12 = smov 16   ;;  %s1022_s26 = smov 24  }
  0x38   : > { %717 = vmatmul.msk.bf16.vlgmr.msra.gmra.mxu0 %vm266_vm0, %v249_v2  ;;  %s736_s27 = sshll.u32 %s1072_s22, 3  ;;  %s708_s28 = sshll.u32 %s1148_s14, 3 }
  0x39   : > { %s593_s22 = scalar_lea.sflag [#allocation6], %s1148_s14 }
  0xb5   : > { %v279_v3 = vpop.f32.mrf.mxu0 }
  0xb6   : > { %v283_v4 = vmul.f32 0.35355338, %v279_v3  ;;  %v287_v6 = vpack.c.bf16 %v279_v3, %v279_v3 }
  0xb8   : > { %v284_v5 = vpack.c.bf16 %v283_v4, %v283_v4 }
  0xba   : > { %286 = vst.msk [vmem:[#allocation2] sm:$0xf] %vm285_vm1, %v284_v5 }
  0xbb   : > { %289 = vst.msk [vmem:[#allocation2] sm:$0xf] %vm288_vm2, %v287_v6 }
  0xbd   : > { %v281_v7 = vpop.f32.mrf.mxu0 }
  0xc2   : > { %v487_v8 = vld [vmem:[#allocation2] sm:$0xf] }
  0xc3   : > { %v353_v9 = vld [vmem:[#allocation2] sm:$0xf]  ;;  %v489_v11 = vunpack.c.l.b16 %v487_v8 }
  0xc4   : > { %v290_v10 = vld [vmem:[#allocation2] sm:$0xf]  ;;  %v355_v12 = vunpack.c.l.b16 %v353_v9 }
  0xc5   : > { %v292_v13 = vunpack.c.l.b16 %v290_v10  ;;  %v1161_v14 = vpack.c.b16 %v489_v11, %v489_v11  ;;  %v420_v17 = vld [vmem:[#allocation2] sm:$0xf] }
  0xc6   : > { %v356_v15 = vpack.c.b16 %v355_v12, %v355_v12  ;;  %v422_v18 = vunpack.c.l.b16 %v420_v17 }
  0xc7   : > { %v293_v16 = vpack.c.b16 %v292_v13, %v292_v13  ;;  %491 = vrot.lane.b32.xlu2 %v1161_v14, %s1009_s23 }
  0xc8   : > { %357 = vrot.lane.b32.xlu1 %v356_v15, %s1010_s13  ;;  %v423_v19 = vpack.c.b16 %v422_v18, %v422_v18 }
  0xc9   : > { %294 = vrot.lane.b32.xlu0 %v293_v16, %s1011_s29  ;;  %s603_s29 = scalar_lea.hbm %s1233_s4, %s736_s27 }
  0xcf   : > { %426 = vrot.lane.b32.xlu2 %v423_v19, %s1012_s30 }
  0xd0   : > { %493 = vrot.lane.b32.xlu1 %v1161_v14, %s1013_s5 }
  0xd1   : > { %359 = vrot.lane.b32.xlu0 %v356_v15, %s1014_s6  ;;  %s247_s6 = scalar_lea.vmem [#allocation10], %s708_s28 }
  0xd7   : > { %326 = vrot.lane.b32.xlu2 %v293_v16, %s1015_s7  ;;  %s605_s7 = sshll.u32 %s247_s6, 4  ;;  %s606_s7 = int_to_ptr.vmem [resolvable:$true] %s605_s7 }
  0xd9   : > { %424 = vrot.lane.b32.xlu0 %v423_v19, %s1016_s9  ;;  %s607_s9 = sshll.u32 %s603_s29, 4  ;;  %s608_s9 = int_to_ptr.hbm [resolvable:$true] %s607_s9 }
  0xdf   : > { %390 = vrot.lane.b32.xlu2 %v356_v15, %s1017_s10  ;;  %s947_s10 = sshra.s32 %s608_s9, 4  ;;  %s948_s10 = int_to_ptr.hbm [resolvable:$true] %s947_s10 }
  0xe0   : > { %p954_p12 = scmp.lt.s32.totalorder %s948_s10, %s1233_s4 }
 0x121   : > { %v492_v20 = vpop.permute.xlu2 %491 }
 0x129   : > { %v427_v21 = vpop.permute.xlu2 %426 }
 0x12a   : > { %v432_v22 = vsel %vm296_vm3, %v427_v21, 0 }
 0x12b   : > { %441 = vmatpush.bf16.xpose.msrb.mxu0 %v432_v22 }
 0x131   : > { %v327_v23 = vpop.permute.xlu2 %326 }
 0x132   : > { %v333_v24 = vsel %vm331_vm4, %v327_v23, 0 }
 0x133   : > { %342 = vmatpush.bf16.msra.mxu2 %v333_v24 }
 0x139   : > { %v391_v26 = vpop.permute.xlu2 %390 }
 0x13a   : > { %v358_v25 = vpop.permute.xlu1 %357  ;;  %v396_v28 = vsel %vm331_vm4, %v391_v26, 0 }
 0x13b   : > { %v295_v27 = vpop.permute.xlu0 %294  ;;  %405 = vmatpush.bf16.msrb.mxu2 %v396_v28 }
 0x13c   : > { %v301_v29 = vsel %vm296_vm3, %v295_v27, 0 }
 0x13d   : > { %310 = vmatpush.bf16.xpose.msra.mxu1 %v301_v29 }
 0x142   : > { %v494_v30 = vpop.permute.xlu1 %493 }
 0x143   : > { %v360_v31 = vpop.permute.xlu0 %359  ;;  %v499_v32 = vsel %vm296_vm3, %v494_v30, 0 }
 0x144   : > { %718 = vmatmul.msk.bf16.vlgmr.msra.gmra.mxu1 %vm296_vm3, %v290_v10  ;;  %v365_v33 = vsel %vm296_vm3, %v360_v31, 0 }
 0x145   : > { %374 = vmatpush.bf16.xpose.msra.mxu3 %v365_v33 }
 0x14b   : > { %v425_v34 = vpop.permute.xlu0 %424 }
 0x14c   : > { %720 = vmatmul.msk.bf16.vlgmr.msra.gmra.mxu3 %vm296_vm3, %v358_v25  ;;  %722 = vmatmul.msk.bf16.vlgmr.msrb.gmra.mxu0 %vm296_vm3, %v425_v34 }
 0x14d   : > { %508 = vmatpush.bf16.xpose.msrb.mxu3 %v499_v32 }
 0x15c   : > { %724 = vmatmul.msk.bf16.vlgmr.msrb.gmra.mxu3 %vm296_vm3, %v492_v20 }
 0x1c1   : > { %v312_v35 = vpop.f32.mrf.mxu1 }
 0x1c2   : > { %v316_v36 = vsel %vm296_vm3, %v312_v35, -inf }
 0x1c3   : > { %317 = vmax.xlane.f32.xlu1 %v316_v36  ;;  %v741_v36 = vld [vmem:[#allocation9] sm:$0xff] }
 0x1c9   : > { %v314_v37 = vpop.f32.mrf.mxu1  ;;  %v443_v38 = vpop.f32.mrf.mxu0 }
 0x1ca   : > { %v447_v39 = vsel %vm296_vm3, %v443_v38, -inf }
 0x1cb   : > { %448 = vmax.xlane.f32.xlu1 %v447_v39 }
 0x1cf   : > { %v376_v40 = vpop.f32.mrf.mxu3 }
 0x1d0   : > { %v380_v41 = vsel %vm296_vm3, %v376_v40, -inf }
 0x1d1   : > { %381 = vmax.xlane.f32.xlu0 %v380_v41  ;;  %v445_v42 = vpop.f32.mrf.mxu0  ;;  %v826_v41 = vld [vmem:[%s1232_s3] ss:$0 sm:$0xff] }
 0x1d7   : > { %v378_v43 = vpop.f32.mrf.mxu3 }
 0x1df   : > { %v510_v44 = vpop.f32.mrf.mxu3 }
 0x1e0   : > { %v514_v45 = vsel %vm296_vm3, %v510_v44, -inf }
 0x1e1   : > { %515 = vmax.xlane.f32.xlu2 %v514_v45 }
 0x1e4   : > { %457 = vrot.lane.b32.xlu1 %v423_v19, %s1018_s21  ;;  %s949_s21 = scalar_lea.hbm %s948_s10, 8 }
 0x1e5   : > { %524 = vrot.lane.b32.xlu0 %v1161_v14, %s1019_s24  ;;  %p950_p1 = scmp.ne.s32.totalorder %s948_s10, %s949_s21 }
 0x1e7   : > { %v512_v46 = vpop.f32.mrf.mxu3  ;;  %p951_p3 = pnand %p950_p1, %p1117_p4 }
 0x1e9   : > { %p952_p5 = pneg %p951_p3 }
 0x236   : > { %v318_v47 = vpop.xlane.xlu1 %317 }
 0x237   : > { %v319_v48 = vsub.f32 %v312_v35, %v318_v47  ;;  %v742_v35 = vld [vmem:[#allocation9 + $0x8] sm:$0xff] }
 0x238   : > { %584 = vmatpush.bf16.msra.mxu0 %v742_v35 }
 0x239   : > { %v320_v49 = vmul.f32 1.442695, %v319_v48 }
 0x23b   : > { %827 = vpow2.f32 %v320_v49 }
 0x23c   : > { %585 = vmatpush.bf16.msra.mxu0 %v741_v36 }
 0x23e   : > { %v449_v52 = vpop.xlane.xlu1 %448 }
 0x23f   : > { %v450_v55 = vsub.f32 %v443_v38, %v449_v52 }
 0x241   : > { %v828_v50 = vpop.eup %827  ;;  %v451_v57 = vmul.f32 1.442695, %v450_v55 }
 0x242   : > { %v325_v51 = vpack.c.bf16 %v828_v50, %v828_v50  ;;  %v322_v9 = vsel %vm296_vm3, %v828_v50, 0.0 }
 0x244   : > { %719 = vmatmul.msk.bf16.vlgmr.msra.gmra.mxu2 %vm296_vm3, %v325_v51  ;;  %v382_v53 = vpop.xlane.xlu0 %381 }
 0x245   : > { %v383_v54 = vsub.f32 %v376_v40, %v382_v53 }
 0x247   : > { %v384_v56 = vmul.f32 1.442695, %v383_v54 }
 0x249   : > { %829 = vpow2.f32 %v384_v56 }
 0x24a   : > { %831 = vpow2.f32 %v451_v57 }
 0x24f   : > { %v830_v58 = vpop.eup %829 }
 0x250   : > { %v386_v59 = vsel %vm296_vm3, %v830_v58, 0.0  ;;  %v389_v60 = vpack.c.bf16 %v830_v58, %v830_v58  ;;  %v832_v62 = vpop.eup %831 }
 0x251   : > { %387 = vadd.xlane.f32.xlu2 %v386_v59  ;;  %v453_v5 = vsel %vm296_vm3, %v832_v62, 0.0  ;;  %v456_v6 = vpack.c.bf16 %v832_v62, %v832_v62 }
 0x254   : > { %v516_v61 = vpop.xlane.xlu2 %515  ;;  %721 = vmatmul.msk.bf16.vlgmr.msrb.gmra.mxu2 %vm296_vm3, %v389_v60 }
 0x255   : > { %v517_v63 = vsub.f32 %v510_v44, %v516_v61 }
 0x256   : > { %v458_v0 = vpop.permute.xlu1 %457 }
 0x257   : > { %v518_v1 = vmul.f32 1.442695, %v517_v63  ;;  %v525_v2 = vpop.permute.xlu0 %524  ;;  %v463_v3 = vsel %vm331_vm4, %v458_v0, 0 }
 0x258   : > { %v530_v4 = vsel %vm331_vm4, %v525_v2, 0  ;;  %472 = vmatpush.bf16.msrb.mxu1 %v463_v3 }
 0x259   : > { %833 = vpow2.f32 %v518_v1  ;;  %539 = vmatpush.bf16.msra.mxu2 %v530_v4  ;;  %454 = vadd.xlane.f32.xlu2 %v453_v5 }
 0x25b   : > { %723 = vmatmul.msk.bf16.vlgmr.msrb.gmra.mxu1 %vm296_vm3, %v456_v6 }
 0x25f   : > { %v834_v7 = vpop.eup %833 }
 0x260   : > { %v520_v8 = vsel %vm296_vm3, %v834_v7, 0.0  ;;  %v523_v10 = vpack.c.bf16 %v834_v7, %v834_v7 }
 0x261   : > { %521 = vadd.xlane.f32.xlu0 %v520_v8  ;;  %323 = vadd.xlane.f32.xlu2 %v322_v9 }
 0x264   : > { %725 = vmatmul.msk.bf16.vlgmr.msra.gmra.mxu2 %vm296_vm3, %v523_v10 }
 0x2c4   : > { %v388_v11 = vpop.xlane.xlu2 %387 }
 0x2c5   : > { %835 = vrcp.f32 %v388_v11 }
 0x2c7   : > { %v344_v12 = vpop.f32.mrf.mxu2 }
 0x2cb   : > { %v836_v16 = vpop.eup %835 }
 0x2cc   : > { %v455_v13 = vpop.xlane.xlu2 %454 }
 0x2cd   : > { %837 = vrcp.f32 %v455_v13 }
 0x2cf   : > { %v346_v14 = vpop.f32.mrf.mxu2 }
 0x2d3   : > { %v838_v18 = vpop.eup %837 }
 0x2d4   : > { %v324_v15 = vpop.xlane.xlu2 %323  ;;  %v522_v26 = vpop.xlane.xlu0 %521 }
 0x2d5   : > { %839 = vrcp.f32 %v324_v15 }
 0x2d6   : > { %841 = vrcp.f32 %v522_v26 }
 0x2d7   : > { %v407_v17 = vpop.f32.mrf.mxu2 }
 0x2d8   : > { %v412_v19 = vmul.f32 %v836_v16, %v407_v17  ;;  %v474_v20 = vpop.f32.mrf.mxu1 }
 0x2d9   : > { %v479_v21 = vmul.f32 %v838_v18, %v474_v20 }
 0x2da   : > { %v413_v22 = vpack.c.bf16 %v412_v19, %v412_v19 }
 0x2db   : > { %v480_v23 = vpack.c.bf16 %v479_v21, %v479_v21  ;;  %v840_v24 = vpop.eup %839 }
 0x2dc   : > { %415 = vrot.lane.b32.xlu1 %v413_v22, %s1020_s25  ;;  %v349_v25 = vmul.f32 %v840_v24, %v344_v12  ;;  %v842_v30 = vpop.eup %841 }
 0x2dd   : > { %482 = vrot.lane.b32.xlu2 %v480_v23, %s1021_s12  ;;  %s953_s12 = scalar_lea.hbm %s1233_s4, 16 }
 0x2de   : > { %v350_v27 = vpack.c.bf16 %v349_v25, %v349_v25  ;;  %p955_p7 = scmp.lt.s32.totalorder %s953_s12, %s949_s21 }
 0x2df   : > { %v409_v28 = vpop.f32.mrf.mxu2 }
 0x2e0   : > { %v476_v29 = vpop.f32.mrf.mxu1  ;;  %352 = vst.msk [vmem:[#allocation3] sm:$0xf] %vm351_vm5, %v350_v27  ;;  %p956_p8 = por %p955_p7, %p954_p12 }
 0x2e2   : > { %p957_p9 = pnand %p956_p8, %p952_p5 }
 0x2e7   : > { %v541_v31 = vpop.f32.mrf.mxu2 }
 0x2e8   : > { %v546_v32 = vmul.f32 %v842_v30, %v541_v31 }
 0x2ea   : > { %v547_v33 = vpack.c.bf16 %v546_v32, %v546_v32 }
 0x2ec   : > { %549 = vrot.lane.b32.xlu1 %v547_v33, %s1022_s26 }
 0x2ef   : > { %v543_v34 = vpop.f32.mrf.mxu2 }
 0x337   : > { %v483_v38 = vpop.permute.xlu2 %482 }
 0x34e   : > { %v416_v37 = vpop.permute.xlu1 %415 }
 0x34f   : > { %419 = vst.msk [vmem:[#allocation3] sm:$0xf] %vm418_vm6, %v416_v37 }
 0x350   : > { %486 = vst.msk [vmem:[#allocation3] sm:$0xf] %vm485_vm7, %v483_v38 }
 0x35e   : > { %v550_v39 = vpop.permute.xlu1 %549 }
 0x35f   : > { %553 = vst.msk [vmem:[#allocation3] sm:$0xf] %vm552_vm8, %v550_v39 }
 0x366   : > { %v554_v40 = vld [vmem:[#allocation3] sm:$0xf] }
 0x367   : > { %734 = vmatmul.msk.bf16.vlgmr.msra.gmra.mxu0 %vm266_vm0, %v554_v40 }
 0x3e4   : > { %v587_v42 = vpop.f32.mrf.mxu0 }
 0x3e5   : > { %v588_v43 = vadd.f32 %v826_v41, %v587_v42 }
 0x3e7   : > { %591 = vst.msk [vmem:[%s247_s6] sm:$0xff] %vm266_vm0, %v588_v43 }
 0x3e8   : > { %960 = shalt.err (!%p957_p9)
}
 0x3e9   : > { %753 = dma.vmem_to_hbm [thread:$0]  (%p1117_p4), %s606_s7, 128, %s608_s9, %s593_s22  }
 0x3ec   : > { %v589_v44 = vpop.f32.mrf.mxu0 }
 0x3ed PF: > { %s619_s14 = sand.u32 1, %s991_s15   ;;  %p1240_p10 = scmp.ge.s32.totalorder %s1003_s18, 2 }
 0x3ee   : > { %s620_s28 = scalar_lea.sflag [#allocation6], %s619_s14 }
 0x3ef   : > { %p767_p13 = pnand %p1240_p10, %p1121_p6 }
 0x3f1   : > { %p768_p11 = pneg %p767_p13 }
 0x3f3   : > { %986 = dma.done.wait (%p768_p11), %s620_s28, 128  }
 0x3f4   : > { %988 = vsyncadd (%p768_p11), %s620_s28, 4294967168  ;;  %p18_p0 = scmp.ge.s32.totalorder %s1091_s8, 4   ;;  %s1241_s15 = smov %s995_s16 }
 0x3f5   : > { %s1242_s16 = smov %s999_s17  ;;  %s1243_s17 = smov %s1102_s11 }
 0x3f6   : > { %s1244_s18 = smov %s1091_s8  ;;  %20 = sbr.rel (!%p18_p0) target bundleno = 6 (0x6), region = 89 }
 0x3fb   :  { %626 = vsyncpa [#allocation5], 1 }
 0x3fc   :  { %628 = vsyncpa [#allocation5 + $0x1], 1 }
 0x3fd   :  { %629 = vsyncpa [#allocation8], 1 }
 0x3fe   :  { %630 = vsyncpa [#allocation6], 1 }
 0x3ff   :  { %632 = vsyncpa [#allocation6 + $0x1], 1 }

</bundles_post_ra>
